<compile_context>
chip_gen: v7x
topology: tpu7x:2x2x1
jax: 0.10.0
libtpu: 0.0.40
codegen_flags: <defaults>
</compile_context>

<pallas_src>
import functools

import jax
import jax.numpy as jnp
from jax.experimental import pallas as pl
from jax.experimental.pallas import tpu as pltpu

LANE = 128          # vreg lane width / MXU column target
NEG_INF = -1e30     # bias for padded output columns -> exp() underflows to 0


def _round_up(x, m):
    return (x + m - 1) // m * m


def mlp_kernel(x_ref, w1_ref, b1_ref, w2_ref, b2_ref, o_ref):
    # fc1 (bf16 MXU operands, f32 accumulate) + bias + tanh (EUP, f32)
    h = jnp.dot(x_ref[...], w1_ref[...], preferred_element_type=jnp.float32)
    h = jnp.tanh(h + b1_ref[...])
    # fc2: cast activations back to bf16 for the MXU, accumulate f32
    logits = jnp.dot(h.astype(w2_ref.dtype), w2_ref[...],
                     preferred_element_type=jnp.float32)
    logits = logits + b2_ref[...]          # padded cols get -1e30 -> exp()=0
    # numerically stable softmax over the (lane-dense, padded) last axis
    m = jnp.max(logits, axis=-1, keepdims=True)
    e = jnp.exp(logits - m)
    denom = jnp.sum(e, axis=-1, keepdims=True)
    o_ref[...] = (e * pl.reciprocal(denom, approx=True)).astype(o_ref.dtype)


@functools.partial(jax.jit, static_argnames=("tile_b",))
def neural_network_forward(x, w1, b1, w2, b2, *, tile_b=512):
    """x: [B, n_in]; w1: [n_in, n_hidden]; b1: [1, n_hidden];
       w2: [n_hidden, n_out]; b2: [1, n_out]  ->  [B, n_out] (f32 softmax)."""
    B, n_in = x.shape
    n_hidden = w1.shape[1]
    n_out = w2.shape[1]

    # ---- pad feature dims to the 128-lane vreg width (lane-dense MXU/output)
    h_pad = _round_up(n_hidden, LANE)
    o_pad = _round_up(n_out, LANE)
    w1p = jnp.pad(w1, ((0, 0), (0, h_pad - n_hidden))).astype(jnp.bfloat16)
    b1p = jnp.pad(b1, ((0, 0), (0, h_pad - n_hidden))).astype(jnp.float32)
    w2p = jnp.pad(w2, ((0, h_pad - n_hidden), (0, o_pad - n_out))).astype(jnp.bfloat16)
    b2p = jnp.pad(b2, ((0, 0), (0, o_pad - n_out)),
                  constant_values=NEG_INF).astype(jnp.float32)

    # ---- tile the batch; pad B so the grid divides evenly
    tb = min(tile_b, _round_up(B, 8))
    b_padded = _round_up(B, tb)
    xp = jnp.pad(x, ((0, b_padded - B), (0, 0))).astype(jnp.bfloat16)
    grid = (b_padded // tb,)

    cost = pl.CostEstimate(
        flops=2 * b_padded * (n_in * h_pad + h_pad * o_pad),
        transcendentals=b_padded * (h_pad + o_pad),
        bytes_accessed=(xp.size * 2 + w1p.size * 2 + w2p.size * 2
                        + b1p.size * 4 + b2p.size * 4
                        + b_padded * o_pad * 4),
    )

    out_padded = pl.pallas_call(
        mlp_kernel,
        out_shape=jax.ShapeDtypeStruct((b_padded, o_pad), jnp.float32),
        grid_spec=pltpu.PrefetchScalarGridSpec(
            num_scalar_prefetch=0,
            grid=grid,
            in_specs=[
                pl.BlockSpec((tb, n_in), lambda i: (i, 0)),     # x tile
                pl.BlockSpec((n_in, h_pad), lambda i: (0, 0)),  # W1 (resident)
                pl.BlockSpec((1, h_pad), lambda i: (0, 0)),     # b1 (resident)
                pl.BlockSpec((h_pad, o_pad), lambda i: (0, 0)), # W2 (resident)
                pl.BlockSpec((1, o_pad), lambda i: (0, 0)),     # b2 (resident)
            ],
            out_specs=pl.BlockSpec((tb, o_pad), lambda i: (i, 0)),
        ),
        compiler_params=pltpu.CompilerParams(
            dimension_semantics=("parallel",),      # megacore shard on v7x
        ),
        cost_estimate=cost,
    )(xp, w1p, b1p, w2p, b2p)

    return out_padded[:B, :n_out]


def init_linear_params(key, fan_in, fan_out):
    """Deterministic PyTorch-style nn.Linear init: U(-1/sqrt(fan_in), +1/sqrt(fan_in))."""
    kw, kb = jax.random.split(key)
    bound = 1.0 / jnp.sqrt(fan_in)
    w = jax.random.uniform(kw, (fan_in, fan_out), jnp.float32, -bound, bound)
    b = jax.random.uniform(kb, (1, fan_out), jnp.float32, -bound, bound)
    return w, b


if __name__ == "__main__":
    B, n_in, n_hidden, n_out = 8, 32, 64, 16

    key = jax.random.PRNGKey(0)
    kx, k1, k2 = jax.random.split(key, 3)

    x = jax.random.normal(kx, (B, n_in), jnp.float32)
    w1, b1 = init_linear_params(k1, n_in, n_hidden)
    w2, b2 = init_linear_params(k2, n_hidden, n_out)

    out = neural_network_forward(x, w1, b1, w2, b2)
    out = jax.block_until_ready(out)

    # reference check in plain JAX (f32); bf16 MXU operands + approx reciprocal
    # -> loosen tolerances accordingly
    ref = jax.nn.softmax(jnp.tanh(x @ w1 + b1) @ w2 + b2, axis=1)
    assert out.shape == (B, n_out), "shape mismatch"
    assert jnp.allclose(out, ref, atol=2e-2), "mismatch vs JAX reference"
    assert jnp.allclose(jnp.sum(out, axis=1), 1.0, atol=5e-3), "softmax rows != 1"

    print("KERNEL_OK")
</pallas_src>

<mosaic_0001>
module attributes {stable_mosaic.version = 11 : i64} {
  func.func @mlp_kernel(%arg0: i32, %arg1: memref<8x32xbf16, #tpu.memory_space<vmem>>, %arg2: memref<32x128xbf16, #tpu.memory_space<vmem>>, %arg3: memref<1x128xf32, #tpu.memory_space<vmem>>, %arg4: memref<128x128xbf16, #tpu.memory_space<vmem>>, %arg5: memref<1x128xf32, #tpu.memory_space<vmem>>, %arg6: memref<8x128xf32, #tpu.memory_space<vmem>>) attributes {dimension_semantics = [#tpu.dimension_semantics<parallel>], iteration_bounds = array<i64: 1>, scalar_prefetch = 0 : i64, scratch_operands = 0 : i64, tpu.core_type = #tpu.core_type<tc>, window_params = [{transform_indices = @transform_0, window_bounds = array<i64: 8, 32>}, {pipeline_mode = #tpu.pipeline_mode<synchronous>, transform_indices = @transform_1, window_bounds = array<i64: 32, 128>}, {pipeline_mode = #tpu.pipeline_mode<synchronous>, transform_indices = @transform_2, window_bounds = array<i64: 1, 128>}, {pipeline_mode = #tpu.pipeline_mode<synchronous>, transform_indices = @transform_3, window_bounds = array<i64: 128, 128>}, {pipeline_mode = #tpu.pipeline_mode<synchronous>, transform_indices = @transform_4, window_bounds = array<i64: 1, 128>}, {transform_indices = @transform_5, window_bounds = array<i64: 8, 128>}]} {
    %c0 = arith.constant 0 : index
    %c0_0 = arith.constant 0 : index
    %0 = vector.load %arg1[%c0, %c0_0] : memref<8x32xbf16, #tpu.memory_space<vmem>>, vector<8x32xbf16>
    %c0_1 = arith.constant 0 : index
    %c0_2 = arith.constant 0 : index
    %1 = vector.load %arg2[%c0_1, %c0_2] : memref<32x128xbf16, #tpu.memory_space<vmem>>, vector<32x128xbf16>
    %cst = arith.constant dense<0.000000e+00> : vector<8x128xf32>
    %2 = tpu.matmul %0, %1, %cst {dimension_numbers = #tpu.dot_dimension_numbers<[1], [0], [0], [1], [0, 0, 1, 1], [], []>} : vector<8x32xbf16>, vector<32x128xbf16>, vector<8x128xf32> -> vector<8x128xf32>
    %c0_3 = arith.constant 0 : index
    %c0_4 = arith.constant 0 : index
    %3 = vector.load %arg3[%c0_3, %c0_4] : memref<1x128xf32, #tpu.memory_space<vmem>>, vector<1x128xf32>
    %4 = vector.broadcast %3 : vector<1x128xf32> to vector<8x128xf32>
    %5 = arith.addf %2, %4 : vector<8x128xf32>
    %6 = math.tanh %5 : vector<8x128xf32>
    %7 = arith.truncf %6 : vector<8x128xf32> to vector<8x128xbf16>
    %c0_5 = arith.constant 0 : index
    %c0_6 = arith.constant 0 : index
    %8 = vector.load %arg4[%c0_5, %c0_6] : memref<128x128xbf16, #tpu.memory_space<vmem>>, vector<128x128xbf16>
    %cst_7 = arith.constant dense<0.000000e+00> : vector<8x128xf32>
    %9 = tpu.matmul %7, %8, %cst_7 {dimension_numbers = #tpu.dot_dimension_numbers<[1], [0], [0], [1], [0, 0, 1, 1], [], []>} : vector<8x128xbf16>, vector<128x128xbf16>, vector<8x128xf32> -> vector<8x128xf32>
    %c0_8 = arith.constant 0 : index
    %c0_9 = arith.constant 0 : index
    %10 = vector.load %arg5[%c0_8, %c0_9] : memref<1x128xf32, #tpu.memory_space<vmem>>, vector<1x128xf32>
    %11 = vector.broadcast %10 : vector<1x128xf32> to vector<8x128xf32>
    %12 = arith.addf %9, %11 : vector<8x128xf32>
    %cst_10 = arith.constant dense<0xFF800000> : vector<8xf32>
    %13 = vector.multi_reduction <maximumf>, %12, %cst_10 [1] : vector<8x128xf32> to vector<8xf32>
    %14 = vector.shape_cast %13 : vector<8xf32> to vector<8x1xf32>
    %15 = vector.broadcast %14 : vector<8x1xf32> to vector<8x128xf32>
    %16 = arith.subf %12, %15 : vector<8x128xf32>
    %17 = math.exp %16 : vector<8x128xf32>
    %cst_11 = arith.constant dense<0.000000e+00> : vector<8xf32>
    %18 = vector.multi_reduction <add>, %17, %cst_11 [1] : vector<8x128xf32> to vector<8xf32>
    %19 = vector.shape_cast %18 : vector<8xf32> to vector<8x1xf32>
    %20 = tpu.reciprocal %19 {approx = true} : vector<8x1xf32> -> vector<8x1xf32>
    %21 = vector.broadcast %20 : vector<8x1xf32> to vector<8x128xf32>
    %22 = arith.mulf %17, %21 : vector<8x128xf32>
    %c0_12 = arith.constant 0 : index
    %c0_13 = arith.constant 0 : index
    %23 = vector.load %arg6[%c0_12, %c0_13] : memref<8x128xf32, #tpu.memory_space<vmem>>, vector<8x128xf32>
    tpu.vector_store %arg6[%c0_12, %c0_13], %22 {strides = array<i32>} : memref<8x128xf32, #tpu.memory_space<vmem>>, vector<8x128xf32>,
    return
  }
  func.func @transform_0(%arg0: i32) -> (i32, i32) {
    %c0_i32 = arith.constant 0 : i32
    %c0_i32_0 = arith.constant 0 : i32
    return %arg0, %c0_i32 : i32, i32
  }
  func.func @transform_1(%arg0: i32) -> (i32, i32) {
    %c0_i32 = arith.constant 0 : i32
    %c0_i32_0 = arith.constant 0 : i32
    %c0_i32_1 = arith.constant 0 : i32
    return %c0_i32, %c0_i32_0 : i32, i32
  }
  func.func @transform_2(%arg0: i32) -> (i32, i32) {
    %c0_i32 = arith.constant 0 : i32
    %c0_i32_0 = arith.constant 0 : i32
    %c0_i32_1 = arith.constant 0 : i32
    return %c0_i32, %c0_i32_0 : i32, i32
  }
  func.func @transform_3(%arg0: i32) -> (i32, i32) {
    %c0_i32 = arith.constant 0 : i32
    %c0_i32_0 = arith.constant 0 : i32
    %c0_i32_1 = arith.constant 0 : i32
    return %c0_i32, %c0_i32_0 : i32, i32
  }
  func.func @transform_4(%arg0: i32) -> (i32, i32) {
    %c0_i32 = arith.constant 0 : i32
    %c0_i32_0 = arith.constant 0 : i32
    %c0_i32_1 = arith.constant 0 : i32
    return %c0_i32, %c0_i32_0 : i32, i32
  }
  func.func @transform_5(%arg0: i32) -> (i32, i32) {
    %c0_i32 = arith.constant 0 : i32
    %c0_i32_0 = arith.constant 0 : i32
    return %arg0, %c0_i32 : i32, i32
  }
}

</mosaic_0001>

<bundles_post_ra>
// kernel: neural_network_forward.1
= control target key start
LH: loop header
LB: loop body
LE: loop exit
PB: predicated region body
PF: predicated region fallthrough
CT: control target
= control target key end

     0   :  { %v323_v1 = vmov 0.0   ;;  %vm324_vm0 = vmmov 0   ;;  %vm46_vm1 = vcmask 261120   ;;  %s407_s0 = inlined_call_operand.vmem [shape: bf16[8,32], index: 0, kind: input, shape index: {}]   ;;  %s408_s1 = inlined_call_operand.vmem [shape: bf16[32,128], index: 1, kind: input, shape index: {}]   ;;  %s409_s2 = inlined_call_operand.vmem [shape: f32[1,128], index: 2, kind: input, shape index: {}]   ;;  %s410_s3 = inlined_call_operand.vmem [shape: bf16[128,128], index: 3, kind: input, shape index: {}]   ;;  %s411_s4 = inlined_call_operand.vmem [shape: f32[1,128], index: 4, kind: input, shape index: {}]   ;;  %s412_s5 = inlined_call_operand.hbm [shape: f32[8,128], index: 5, kind: output, shape index: {}]  }
   0x1   :  { %v283_v0 = vld [vmem:[%s408_s1] sm:$0xff]   ;;  %252 = vmatprep.subr.bf16.mxu0 %v323_v1  ;;  %260 = vmatprep.subr.bf16.mxu1 %v323_v1  ;;  %v284_v2 = vld [vmem:[%s408_s1 + $0x8] sm:$0xff]   ;;  %v287_v6 = vld [vmem:[%s410_s3 + $0x10] sm:$0xff]  }
   0x2   :  { %253 = vmatpush3.bf16.msra.mxu0 %v283_v0  ;;  %256 = vmatprep.mubr.msk.bf16.mxu0 %vm324_vm0, %v323_v1  ;;  %v285_v3 = vld [vmem:[%s410_s3] sm:$0xff]   ;;  %v286_v4 = vld [vmem:[%s410_s3 + $0x8] sm:$0xff]  }
   0x3   :  { %254 = vmatprep.subr.bf16.mxu0 %v323_v1  ;;  %276 = vmatprep.mubr.msk.bf16.mxu1 %vm324_vm0, %v323_v1  ;;  %v22_v5 = vld [vmem:[%s407_s0] sm:$0xf] }
   0x4   :  { %261 = vmatpush3.bf16.msra.mxu1 %v285_v3 }
   0x5   :  { %262 = vmatprep.subr.bf16.mxu1 %v323_v1 }
   0x6   :  { %255 = vmatpush3.bf16.msra.mxu0 %v284_v2 }
   0x8   :  { %263 = vmatpush3.bf16.msra.mxu1 %v286_v4 }
   0x9   :  { %257 = vmatmul.mubr.msk.bf16.vlgmr.msra.gmra.mrb[0].mxu0 %vm46_vm1, %v22_v5  ;;  %264 = vmatprep.subr.bf16.mxu1 %v323_v1 }
   0xa   :  { %10 = vsyncpa [#allocation3], 0  ;;  %v288_v7 = vld [vmem:[%s410_s3 + $0x18] sm:$0xff]   ;;  %v289_v8 = vld [vmem:[%s410_s3 + $0x20] sm:$0xff]  }
   0xb   :  { %v290_v9 = vld [vmem:[%s410_s3 + $0x28] sm:$0xff]   ;;  %v291_v10 = vld [vmem:[%s410_s3 + $0x30] sm:$0xff]   ;;  %v292_v11 = vld [vmem:[%s410_s3 + $0x38] sm:$0xff]  }
   0xc   :  { %265 = vmatpush3.bf16.msra.mxu1 %v287_v6  ;;  %v227_v12 = vld [vmem:[%s409_s2] ss:$0 sm:$0xff]  ;;  %s325_s2 = smov [#allocation2]  }
   0xd   :  { %266 = vmatprep.subr.bf16.mxu1 %v323_v1  ;;  %v231_v20 = vld [vmem:[%s411_s4] ss:$0 sm:$0xff]  ;;  %s219_s3 = sshll.u32 %s325_s2, 4  ;;  %s220_s3 = int_to_ptr.vmem [resolvable:$true] %s219_s3 }
   0xe   :  { %s299_s4 = scalar_lea.vmem %s220_s3, 128  ;;  %p304_p1 = scmp.lt.s32.totalorder %s220_s3, %s220_s3 }
   0xf   :  { %p300_p0 = scmp.ne.s32.totalorder %s220_s3, %s299_s4  ;;  %p305_p2 = scmp.lt.s32.totalorder %s299_s4, %s299_s4 }
  0x10   :  { %267 = vmatpush3.bf16.msra.mxu1 %v288_v7 }
  0x11   :  { %268 = vmatprep.subr.bf16.mxu1 %v323_v1  ;;  %p306_p3 = por %p305_p2, %p304_p1 }
  0x13   :  { %p307_p4 = pnand %p306_p3, %p300_p0 }
  0x14   :  { %269 = vmatpush3.bf16.msra.mxu1 %v289_v8 }
  0x15   :  { %270 = vmatprep.subr.bf16.mxu1 %v323_v1 }
  0x18   :  { %271 = vmatpush3.bf16.msra.mxu1 %v290_v9 }
  0x19   :  { %272 = vmatprep.subr.bf16.mxu1 %v323_v1 }
  0x1c   :  { %273 = vmatpush3.bf16.msra.mxu1 %v291_v10 }
  0x1d   :  { %274 = vmatprep.subr.bf16.mxu1 %v323_v1 }
  0x20   :  { %275 = vmatpush3.bf16.msra.mxu1 %v292_v11 }
  0xdc   :  { %v84_v13 = vpop.f32.mrb[0].mxu0 }
  0xdd   :  { %v85_v14 = vadd.f32 %v227_v12, %v84_v13  ;;  %v258_v15 = vpop.f32.mrb[1].mxu0 }
  0xde   :  { %v87_v16 = vpop.f32.mrb[2].mxu0 }
  0xdf   :  { %293 = vtanh.f32 %v85_v14  ;;  %v259_v17 = vpop.f32.mrb[3].mxu0 }
  0xe9   :  { %v294_v18 = vpop.eup %293 }
  0xea   :  { %v91_v19 = vpack.c.bf16 %v294_v18, %v294_v18 }
  0xec   :  { %277 = vmatmul.mubr.bf16.vlgmr.msra.gmra.mrb[0].mxu1 %v91_v19 }
 0x1bf   :  { %v197_v21 = vpop.f32.mrb[0].mxu1 }
 0x1c0   :  { %v198_v22 = vadd.f32 %v231_v20, %v197_v21  ;;  %v278_v23 = vpop.f32.mrb[1].mxu1 }
 0x1c1   :  { %v200_v24 = vpop.f32.mrb[2].mxu1 }
 0x1c2   :  { %203 = vmax.xlane.f32.xlu0 %v198_v22  ;;  %v279_v25 = vpop.f32.mrb[3].mxu1 }
 0x24f   :  { %v204_v26 = vpop.xlane.xlu0 %203 }
 0x250   :  { %v205_v27 = vsub.f32 %v198_v22, %v204_v26 }
 0x252   :  { %v206_v28 = vmul.f32 1.442695, %v205_v27 }
 0x254   :  { %295 = vpow2.f32 %v206_v28 }
 0x25e   :  { %v296_v29 = vpop.eup %295 }
 0x25f   :  { %208 = vadd.xlane.f32.xlu0 %v296_v29 }
 0x2ec   :  { %v209_v30 = vpop.xlane.xlu0 %208 }
 0x2ed   :  { %297 = vrcp.f32 %v209_v30 }
 0x2f7   :  { %v298_v31 = vpop.eup %297 }
 0x2f8   :  { %v211_v32 = vmul.f32 %v298_v31, %v296_v29 }
 0x2fa   :  { %212 = vst [vmem:[#allocation2] sm:$0xff] %v211_v32 }
 0x2fb   :  { %310 = shalt.err (!%p307_p4)
}
 0x2fc   :  { %s311_s19 = scalar_lea.hbm %s412_s5, 128 }
 0x2fd   :  { %p312_p5 = scmp.ne.s32.totalorder %s412_s5, %s311_s19  ;;  %p315_p6 = scmp.lt.u32.totalorder %s311_s19, %s412_s5 }
 0x2ff   :  { %p317_p7 = pnand %p315_p6, %p312_p5 }
 0x301   :  { %320 = shalt.err (!%p317_p7)
}
 0x302   :  { %222 = dma.vmem_to_hbm [thread:$0]  %s220_s3, 128, %s412_s5, [#allocation3]  }
 0x303   :  { %321 = dma.done.wait [#allocation3], 128  }
 0x304   :  { %322 = vsyncadd [#allocation3], 4294967168 }
 0x305   :  { %226 = vsyncpa [#allocation3], 1 }

</bundles_post_ra>
